<compile_context>
chip_gen: v7x
topology: tpu7x:2x2x1
jax: 0.10.0
libtpu: 0.0.40
codegen_flags: <defaults>
</compile_context>

<pallas_src>
import jax
import jax.numpy as jnp
from jax.experimental import pallas as pl
from jax.experimental.pallas import tpu as pltpu


def _mlp_kernel_onehot(obs_ref, act_ref, w1o_ref, w1a_ref, b1_ref,
                       w2_ref, b2_ref, w3_ref, b3_ref, o_ref):
    # concat([obs, act], -1) @ W1  ==  obs @ W1[:obs_dim] + act @ W1[obs_dim:]
    h1 = (jnp.dot(obs_ref[...], w1o_ref[...], preferred_element_type=jnp.float32)
          + jnp.dot(act_ref[...], w1a_ref[...], preferred_element_type=jnp.float32)
          + b1_ref[...])
    h1 = jnp.maximum(h1, 0.0)
    h2 = jnp.dot(h1, w2_ref[...], preferred_element_type=jnp.float32) + b2_ref[...]
    h2 = jnp.maximum(h2, 0.0)
    out = jnp.dot(h2, w3_ref[...], preferred_element_type=jnp.float32) + b3_ref[...]
    o_ref[...] = out.astype(o_ref.dtype)


def _mlp_kernel_discrete(obs_ref, idx_ref, w1o_ref, w1a_ref, b1_ref,
                         w2_ref, b2_ref, w3_ref, b3_ref, o_ref):
    # One-hot built entirely in VMEM (no [N, action_dim] HBM array); equivalent to
    # gathering rows of the small, resident W1_act.
    idx = idx_ref[...]                                          # (tm, 1) int32
    tm = obs_ref.shape[0]
    action_dim = w1a_ref.shape[0]
    lanes = jax.lax.broadcasted_iota(jnp.int32, (tm, action_dim), 1)
    onehot = (lanes == idx).astype(jnp.float32)                 # (tm, action_dim)
    h1 = (jnp.dot(obs_ref[...], w1o_ref[...], preferred_element_type=jnp.float32)
          + jnp.dot(onehot, w1a_ref[...], preferred_element_type=jnp.float32)
          + b1_ref[...])
    h1 = jnp.maximum(h1, 0.0)
    h2 = jnp.dot(h1, w2_ref[...], preferred_element_type=jnp.float32) + b2_ref[...]
    h2 = jnp.maximum(h2, 0.0)
    out = jnp.dot(h2, w3_ref[...], preferred_element_type=jnp.float32) + b3_ref[...]
    o_ref[...] = out.astype(o_ref.dtype)


def vector_encoder_forward(obs, actions, params, *, tm=1024):
    """
    obs:     [B, S, obs_dim]      float
    actions: [B, S, action_dim]   (one-hot, float) or [B, S] (discrete int)
    returns: [B, S, latent_dim]

    tm: row tile (rows = B*S flattened).  Default 1024 (multiple of 256); for real
    workloads keep it 512-2048 so the grid still has several steps per TensorCore
    (v7x has 2 TCs sharded over the "parallel" grid axis).
    """
    w1, b1, w2, b2, w3, b3 = params
    obs_dim = obs.shape[-1]
    input_dim, hidden_dim = w1.shape
    action_dim = input_dim - obs_dim
    latent_dim = w3.shape[1]

    B, S = obs.shape[0], obs.shape[1]
    N = B * S

    # Split W1 so the concat never happens (tiny weight slices, done once under jit).
    w1_obs = w1[:obs_dim]                       # (obs_dim, hidden)
    w1_act = w1[obs_dim:]                       # (action_dim, hidden)
    b1_2d = b1.reshape(1, hidden_dim)
    b2_2d = b2.reshape(1, hidden_dim)
    b3_2d = b3.reshape(1, latent_dim)

    obs2 = obs.reshape(N, obs_dim)

    if actions.ndim == 2:
        # Discrete action indices: passed as int32 [N, 1]; one-hot built in-kernel.
        act_in = actions.reshape(N, 1).astype(jnp.int32)
        act_feat = 1
        kernel = _mlp_kernel_discrete
    else:
        act_in = actions.reshape(N, action_dim).astype(obs.dtype)
        act_feat = action_dim
        kernel = _mlp_kernel_onehot

    # Row tile: multiple of 8 (f32 sublanes), clamped for small N. Ragged last tile is
    # handled by Pallas partial-block masking (no jnp.pad pass over the activations).
    tm_eff = min(tm, ((N + 7) // 8) * 8)
    tm_eff = ((tm_eff + 7) // 8) * 8
    grid = (pl.cdiv(N, tm_eff),)

    row = lambda i: (i, 0)      # activations: tile over rows
    rep = lambda i: (0, 0)      # weights/biases: same (whole) block every step

    out = pl.pallas_call(
        kernel,
        out_shape=jax.ShapeDtypeStruct((N, latent_dim), obs.dtype),
        grid=grid,
        in_specs=[
            pl.BlockSpec((tm_eff, obs_dim), row),
            pl.BlockSpec((tm_eff, act_feat), row),
            pl.BlockSpec((obs_dim, hidden_dim), rep),
            pl.BlockSpec((action_dim, hidden_dim), rep),
            pl.BlockSpec((1, hidden_dim), rep),
            pl.BlockSpec((hidden_dim, hidden_dim), rep),
            pl.BlockSpec((1, hidden_dim), rep),
            pl.BlockSpec((hidden_dim, latent_dim), rep),
            pl.BlockSpec((1, latent_dim), rep),
        ],
        out_specs=pl.BlockSpec((tm_eff, latent_dim), row),
        compiler_params=pltpu.CompilerParams(
            dimension_semantics=("parallel",)),
    )(obs2, act_in, w1_obs, w1_act, b1_2d, w2, b2_2d, w3, b3_2d)

    return out.reshape(B, S, latent_dim)


def init_params(key, obs_dim, action_dim, latent_dim, hidden_dim):
    """Deterministic synthetic init (nn.Linear shapes, stored transposed as [in, out])."""
    input_dim = obs_dim + action_dim
    ks = jax.random.split(key, 6)

    def lin(kw, kb, fan_in, fan_out):
        bound = 1.0 / jnp.sqrt(fan_in)
        w = jax.random.uniform(kw, (fan_in, fan_out), jnp.float32, -bound, bound)
        b = jax.random.uniform(kb, (fan_out,), jnp.float32, -bound, bound)
        return w, b

    w1, b1 = lin(ks[0], ks[1], input_dim, hidden_dim)
    w2, b2 = lin(ks[2], ks[3], hidden_dim, hidden_dim)
    w3, b3 = lin(ks[4], ks[5], hidden_dim, latent_dim)
    return (w1, b1, w2, b2, w3, b3)


def _reference_forward(obs, actions, params):
    """Pure-JAX reference of the PyTorch forward."""
    w1, b1, w2, b2, w3, b3 = params
    action_dim = w1.shape[0] - obs.shape[-1]
    if actions.ndim == 2:
        actions = jax.nn.one_hot(actions, num_classes=action_dim, dtype=obs.dtype)
    x = jnp.concatenate([obs, actions], axis=-1)
    h1 = jax.nn.relu(x @ w1 + b1)
    h2 = jax.nn.relu(h1 @ w2 + b2)
    return h2 @ w3 + b3


if __name__ == "__main__":
    batch, seq = 2, 8
    obs_dim, action_dim, latent_dim, hidden_dim = 12, 4, 8, 32

    key = jax.random.PRNGKey(0)
    k_obs, k_act, k_param = jax.random.split(key, 3)

    obs = jax.random.normal(k_obs, (batch, seq, obs_dim), jnp.float32)
    act_idx = jax.random.randint(k_act, (batch, seq), 0, action_dim)        # [B, S] int
    actions_onehot = jax.nn.one_hot(act_idx, action_dim, dtype=jnp.float32)  # [B, S, A]

    params = init_params(k_param, obs_dim, action_dim, latent_dim, hidden_dim)

    fwd = jax.jit(vector_encoder_forward)

    # Path 1: one-hot float actions (torch.cat fused into the kernel).
    lat1 = jax.block_until_ready(fwd(obs, actions_onehot, params))
    ref1 = _reference_forward(obs, actions_onehot, params)
    assert lat1.shape == (batch, seq, latent_dim)
    assert jnp.allclose(lat1, ref1, atol=1e-5, rtol=1e-5)

    # Path 2: discrete actions (one-hot built in VMEM inside the kernel).
    lat2 = jax.block_until_ready(fwd(obs, act_idx, params))
    ref2 = _reference_forward(obs, act_idx, params)
    assert lat2.shape == (batch, seq, latent_dim)
    assert jnp.allclose(lat2, ref2, atol=1e-5, rtol=1e-5)
    assert jnp.allclose(lat2, ref1, atol=1e-5, rtol=1e-5)

    print("KERNEL_OK")
</pallas_src>

<mosaic_0001>
module attributes {stable_mosaic.version = 11 : i64} {
  func.func @_mlp_kernel_onehot(%arg0: i32, %arg1: memref<16x12xf32, #tpu.memory_space<vmem>>, %arg2: memref<16x4xf32, #tpu.memory_space<vmem>>, %arg3: memref<12x32xf32, #tpu.memory_space<vmem>>, %arg4: memref<4x32xf32, #tpu.memory_space<vmem>>, %arg5: memref<1x32xf32, #tpu.memory_space<vmem>>, %arg6: memref<32x32xf32, #tpu.memory_space<vmem>>, %arg7: memref<1x32xf32, #tpu.memory_space<vmem>>, %arg8: memref<32x8xf32, #tpu.memory_space<vmem>>, %arg9: memref<1x8xf32, #tpu.memory_space<vmem>>, %arg10: memref<16x8xf32, #tpu.memory_space<vmem>>) attributes {dimension_semantics = [#tpu.dimension_semantics<parallel>], iteration_bounds = array<i64: 1>, scalar_prefetch = 0 : i64, scratch_operands = 0 : i64, tpu.core_type = #tpu.core_type<tc>, window_params = [{transform_indices = @transform_0, window_bounds = array<i64: 16, 12>}, {transform_indices = @transform_1, window_bounds = array<i64: 16, 4>}, {pipeline_mode = #tpu.pipeline_mode<synchronous>, transform_indices = @transform_2, window_bounds = array<i64: 12, 32>}, {pipeline_mode = #tpu.pipeline_mode<synchronous>, transform_indices = @transform_3, window_bounds = array<i64: 4, 32>}, {pipeline_mode = #tpu.pipeline_mode<synchronous>, transform_indices = @transform_4, window_bounds = array<i64: 1, 32>}, {pipeline_mode = #tpu.pipeline_mode<synchronous>, transform_indices = @transform_5, window_bounds = array<i64: 32, 32>}, {pipeline_mode = #tpu.pipeline_mode<synchronous>, transform_indices = @transform_6, window_bounds = array<i64: 1, 32>}, {pipeline_mode = #tpu.pipeline_mode<synchronous>, transform_indices = @transform_7, window_bounds = array<i64: 32, 8>}, {pipeline_mode = #tpu.pipeline_mode<synchronous>, transform_indices = @transform_8, window_bounds = array<i64: 1, 8>}, {transform_indices = @transform_9, window_bounds = array<i64: 16, 8>}]} {
    %c0 = arith.constant 0 : index
    %c0_0 = arith.constant 0 : index
    %0 = vector.load %arg1[%c0, %c0_0] : memref<16x12xf32, #tpu.memory_space<vmem>>, vector<16x12xf32>
    %c0_1 = arith.constant 0 : index
    %c0_2 = arith.constant 0 : index
    %1 = vector.load %arg3[%c0_1, %c0_2] : memref<12x32xf32, #tpu.memory_space<vmem>>, vector<12x32xf32>
    %cst = arith.constant dense<0.000000e+00> : vector<16x32xf32>
    %2 = tpu.matmul %0, %1, %cst {dimension_numbers = #tpu.dot_dimension_numbers<[1], [0], [0], [1], [0, 0, 1, 1], [], []>} : vector<16x12xf32>, vector<12x32xf32>, vector<16x32xf32> -> vector<16x32xf32>
    %c0_3 = arith.constant 0 : index
    %c0_4 = arith.constant 0 : index
    %3 = vector.load %arg2[%c0_3, %c0_4] : memref<16x4xf32, #tpu.memory_space<vmem>>, vector<16x4xf32>
    %c0_5 = arith.constant 0 : index
    %c0_6 = arith.constant 0 : index
    %4 = vector.load %arg4[%c0_5, %c0_6] : memref<4x32xf32, #tpu.memory_space<vmem>>, vector<4x32xf32>
    %cst_7 = arith.constant dense<0.000000e+00> : vector<16x32xf32>
    %5 = tpu.matmul %3, %4, %cst_7 {dimension_numbers = #tpu.dot_dimension_numbers<[1], [0], [0], [1], [0, 0, 1, 1], [], []>} : vector<16x4xf32>, vector<4x32xf32>, vector<16x32xf32> -> vector<16x32xf32>
    %6 = arith.addf %2, %5 : vector<16x32xf32>
    %c0_8 = arith.constant 0 : index
    %c0_9 = arith.constant 0 : index
    %7 = vector.load %arg5[%c0_8, %c0_9] : memref<1x32xf32, #tpu.memory_space<vmem>>, vector<1x32xf32>
    %8 = vector.broadcast %7 : vector<1x32xf32> to vector<16x32xf32>
    %9 = arith.addf %6, %8 : vector<16x32xf32>
    %cst_10 = arith.constant 0.000000e+00 : f32
    %10 = vector.broadcast %cst_10 : f32 to vector<16x32xf32>
    %11 = arith.maximumf %9, %10 : vector<16x32xf32>
    %c0_11 = arith.constant 0 : index
    %c0_12 = arith.constant 0 : index
    %12 = vector.load %arg6[%c0_11, %c0_12] : memref<32x32xf32, #tpu.memory_space<vmem>>, vector<32x32xf32>
    %cst_13 = arith.constant dense<0.000000e+00> : vector<16x32xf32>
    %13 = tpu.matmul %11, %12, %cst_13 {dimension_numbers = #tpu.dot_dimension_numbers<[1], [0], [0], [1], [0, 0, 1, 1], [], []>} : vector<16x32xf32>, vector<32x32xf32>, vector<16x32xf32> -> vector<16x32xf32>
    %c0_14 = arith.constant 0 : index
    %c0_15 = arith.constant 0 : index
    %14 = vector.load %arg7[%c0_14, %c0_15] : memref<1x32xf32, #tpu.memory_space<vmem>>, vector<1x32xf32>
    %15 = vector.broadcast %14 : vector<1x32xf32> to vector<16x32xf32>
    %16 = arith.addf %13, %15 : vector<16x32xf32>
    %cst_16 = arith.constant 0.000000e+00 : f32
    %17 = vector.broadcast %cst_16 : f32 to vector<16x32xf32>
    %18 = arith.maximumf %16, %17 : vector<16x32xf32>
    %c0_17 = arith.constant 0 : index
    %c0_18 = arith.constant 0 : index
    %19 = vector.load %arg8[%c0_17, %c0_18] : memref<32x8xf32, #tpu.memory_space<vmem>>, vector<32x8xf32>
    %cst_19 = arith.constant dense<0.000000e+00> : vector<16x8xf32>
    %20 = tpu.matmul %18, %19, %cst_19 {dimension_numbers = #tpu.dot_dimension_numbers<[1], [0], [0], [1], [0, 0, 1, 1], [], []>} : vector<16x32xf32>, vector<32x8xf32>, vector<16x8xf32> -> vector<16x8xf32>
    %c0_20 = arith.constant 0 : index
    %c0_21 = arith.constant 0 : index
    %21 = vector.load %arg9[%c0_20, %c0_21] : memref<1x8xf32, #tpu.memory_space<vmem>>, vector<1x8xf32>
    %22 = vector.broadcast %21 : vector<1x8xf32> to vector<16x8xf32>
    %23 = arith.addf %20, %22 : vector<16x8xf32>
    %c0_22 = arith.constant 0 : index
    %c0_23 = arith.constant 0 : index
    %24 = vector.load %arg10[%c0_22, %c0_23] : memref<16x8xf32, #tpu.memory_space<vmem>>, vector<16x8xf32>
    tpu.vector_store %arg10[%c0_22, %c0_23], %23 {strides = array<i32>} : memref<16x8xf32, #tpu.memory_space<vmem>>, vector<16x8xf32>,
    return
  }
  func.func @transform_0(%arg0: i32) -> (i32, i32) {
    %c0_i32 = arith.constant 0 : i32
    %c0_i32_0 = arith.constant 0 : i32
    return %arg0, %c0_i32 : i32, i32
  }
  func.func @transform_1(%arg0: i32) -> (i32, i32) {
    %c0_i32 = arith.constant 0 : i32
    %c0_i32_0 = arith.constant 0 : i32
    return %arg0, %c0_i32 : i32, i32
  }
  func.func @transform_2(%arg0: i32) -> (i32, i32) {
    %c0_i32 = arith.constant 0 : i32
    %c0_i32_0 = arith.constant 0 : i32
    %c0_i32_1 = arith.constant 0 : i32
    return %c0_i32, %c0_i32_0 : i32, i32
  }
  func.func @transform_3(%arg0: i32) -> (i32, i32) {
    %c0_i32 = arith.constant 0 : i32
    %c0_i32_0 = arith.constant 0 : i32
    %c0_i32_1 = arith.constant 0 : i32
    return %c0_i32, %c0_i32_0 : i32, i32
  }
  func.func @transform_4(%arg0: i32) -> (i32, i32) {
    %c0_i32 = arith.constant 0 : i32
    %c0_i32_0 = arith.constant 0 : i32
    %c0_i32_1 = arith.constant 0 : i32
    return %c0_i32, %c0_i32_0 : i32, i32
  }
  func.func @transform_5(%arg0: i32) -> (i32, i32) {
    %c0_i32 = arith.constant 0 : i32
    %c0_i32_0 = arith.constant 0 : i32
    %c0_i32_1 = arith.constant 0 : i32
    return %c0_i32, %c0_i32_0 : i32, i32
  }
  func.func @transform_6(%arg0: i32) -> (i32, i32) {
    %c0_i32 = arith.constant 0 : i32
    %c0_i32_0 = arith.constant 0 : i32
    %c0_i32_1 = arith.constant 0 : i32
    return %c0_i32, %c0_i32_0 : i32, i32
  }
  func.func @transform_7(%arg0: i32) -> (i32, i32) {
    %c0_i32 = arith.constant 0 : i32
    %c0_i32_0 = arith.constant 0 : i32
    %c0_i32_1 = arith.constant 0 : i32
    return %c0_i32, %c0_i32_0 : i32, i32
  }
  func.func @transform_8(%arg0: i32) -> (i32, i32) {
    %c0_i32 = arith.constant 0 : i32
    %c0_i32_0 = arith.constant 0 : i32
    %c0_i32_1 = arith.constant 0 : i32
    return %c0_i32, %c0_i32_0 : i32, i32
  }
  func.func @transform_9(%arg0: i32) -> (i32, i32) {
    %c0_i32 = arith.constant 0 : i32
    %c0_i32_0 = arith.constant 0 : i32
    return %arg0, %c0_i32 : i32, i32
  }
}

</mosaic_0001>

<bundles_post_ra>
// kernel: vector_encoder_forward.1
= control target key start
LH: loop header
LB: loop body
LE: loop exit
PB: predicated region body
PF: predicated region fallthrough
CT: control target
= control target key end

     0   :  { %vm47_vm0 = vcmask 1043456   ;;  %vm546_vm1 = vmmov 1   ;;  %vm40_vm3 = vcmask 31744   ;;  %vm126_vm4 = vcmask 97280   ;;  %s670_s0 = inlined_call_operand.vmem [shape: f32[16,12], index: 0, kind: input, shape index: {}]   ;;  %s671_s1 = inlined_call_operand.vmem [shape: f32[16,4], index: 1, kind: input, shape index: {}]   ;;  %s672_s2 = inlined_call_operand.vmem [shape: f32[12,32], index: 2, kind: input, shape index: {}]   ;;  %s673_s3 = inlined_call_operand.vmem [shape: f32[4,32], index: 3, kind: input, shape index: {}]   ;;  %s674_s4 = inlined_call_operand.vmem [shape: f32[1,32], index: 4, kind: input, shape index: {}]   ;;  %s675_s5 = inlined_call_operand.vmem [shape: f32[32,32], index: 5, kind: input, shape index: {}]   ;;  %s676_s6 = inlined_call_operand.vmem [shape: f32[1,32], index: 6, kind: input, shape index: {}]   ;;  %s677_s7 = inlined_call_operand.vmem [shape: f32[32,8], index: 7, kind: input, shape index: {}]   ;;  %s678_s8 = inlined_call_operand.vmem [shape: f32[1,8], index: 8, kind: input, shape index: {}]   ;;  %s679_s9 = inlined_call_operand.hbm [shape: f32[16,8], index: 9, kind: output, shape index: {}]  }
   0x1   :  { %v35_v0 = vld [vmem:[%s672_s2] sm:$0xff]  ;;  %v36_v1 = vld [vmem:[%s672_s2 + $0x8] sm:$0xf]  ;;  %vm495_vm2 = vmpackc.low %vm47_vm0, %vm546_vm1 }
   0x2   :  { %v37_v2 = vld [vmem:[%s671_s1] sm:$0xff]  ;;  %v494_v3 = vpack.c.bf16 %v36_v1, %v35_v0  ;;  %v38_v5 = vld [vmem:[%s671_s1 + $0x8] sm:$0xff] }
   0x3   :  { %v39_v4 = vld [vmem:[%s673_s3] sm:$0xf]  ;;  %462 = vmatprep.mubr.msk.f32.mxu1 %vm40_vm3, %v37_v2 }
   0x4   :  { %460 = vmatprep.subr.msk.mxu1 %vm47_vm0, %v39_v4  ;;  %v33_v6 = vld [vmem:[%s670_s0] sm:$0xff] }
   0x5   :  { %14 = vsyncpa [#allocation3], 0  ;;  %496 = vmatprep.subr.msk.bf16.mxu0 %vm495_vm2, %v494_v3  ;;  %461 = vmatpush3.msk.msra.mxu1 %vm47_vm0, %v39_v4  ;;  %v34_v7 = vld [vmem:[%s670_s0 + $0x8] sm:$0xff]  ;;  %v222_v8 = vld [vmem:[%s675_s5] sm:$0xff]  ;;  %vm233_vm5 = vcmask 261120   ;;  %vm409_vm6 = vcmask 64512  }
   0x6   :  { %499 = vmatpush3.bf16.msk.msra.mxu0 %vm495_vm2, %v494_v3  ;;  %463 = vmatmul.mubr.msk.f32.vlgmr.msra.gmra.mrb[0].mxu1 %vm40_vm3, %v38_v5  ;;  %v223_v9 = vld [vmem:[%s675_s5 + $0x8] sm:$0xff]  ;;  %v224_v11 = vld [vmem:[%s675_s5 + $0x10] sm:$0xff]  ;;  %v225_v12 = vld [vmem:[%s675_s5 + $0x18] sm:$0xff] }
   0x7   :  { %469 = vmatprep.mubr.msk.f32.mxu0 %vm126_vm4, %v33_v6  ;;  %v500_v10 = vpack.c.bf16 %v223_v9, %v222_v8  ;;  %v504_v13 = vpack.c.bf16 %v225_v12, %v224_v11  ;;  %v317_v14 = vld [vmem:[%s677_s7] sm:$0xff]  ;;  %v318_v15 = vld [vmem:[%s677_s7 + $0x8] sm:$0xff]  ;;  %v319_v28 = vld [vmem:[%s677_s7 + $0x10] sm:$0xff] }
   0x8   :  { %v508_v16 = vpack.c.bf16 %v318_v15, %v317_v14  ;;  %v434_v20 = vld [vmem:[%s674_s4] ss:$0 sm:$0xff]  ;;  %v320_v29 = vld [vmem:[%s677_s7 + $0x18] sm:$0xff]  ;;  %s547_s7 = smov [#allocation2]  }
   0x9   :  { %470 = vmatmul.mubr.msk.f32.vlgmr.msra.gmra.mrb[0].mxu0 %vm126_vm4, %v34_v7  ;;  %501 = vmatprep.subr.bf16.mxu1 %v500_v10  ;;  %v512_v30 = vpack.c.bf16 %v320_v29, %v319_v28  ;;  %v435_v31 = vld [vmem:[%s676_s6] ss:$0 sm:$0xff]  ;;  %s417_s18 = sshll.u32 %s547_s7, 4  ;;  %s418_s18 = int_to_ptr.vmem [resolvable:$true] %s417_s18 }
   0xa   :  { %503 = vmatpush3.bf16.msra.mxu1 %v500_v10  ;;  %509 = vmatprep.subr.bf16.mxu0 %v508_v16  ;;  %v438_v38 = vld [vmem:[%s678_s8] ss:$0 sm:$0xff]  ;;  %s522_s6 = scalar_lea.vmem %s418_s18, 256  ;;  %p527_p1 = scmp.lt.s32.totalorder %s418_s18, %s418_s18 }
   0xb   :  { %505 = vmatprep.subr.bf16.mxu1 %v504_v13  ;;  %511 = vmatpush3.bf16.msra.mxu0 %v508_v16  ;;  %p523_p0 = scmp.ne.s32.totalorder %s418_s18, %s522_s6  ;;  %p528_p2 = scmp.lt.s32.totalorder %s522_s6, %s522_s6 }
   0xc   :  { %513 = vmatprep.subr.bf16.mxu0 %v512_v30 }
   0xd   :  { %p529_p3 = por %p528_p2, %p527_p1 }
   0xe   :  { %507 = vmatpush3.bf16.msra.mxu1 %v504_v13 }
   0xf   :  { %515 = vmatpush3.bf16.msra.mxu0 %v512_v30  ;;  %p530_p4 = pnand %p529_p3, %p523_p0 }
  0xd9   :  { %v464_v17 = vpop.f32.mrb[0].mxu1 }
  0xda   :  { %v117_v18 = vpop.f32.mrb[1].mxu1 }
  0xdc   :  { %v471_v19 = vpop.f32.mrb[0].mxu0 }
  0xdd   :  { %v208_v21 = vadd.f32 %v471_v19, %v464_v17  ;;  %v202_v22 = vpop.f32.mrb[1].mxu0 }
  0xde   :  { %v203_v23 = vadd.f32 %v202_v22, %v117_v18 }
  0xdf   :  { %v219_v24 = vadd.f32 %v434_v20, %v208_v21 }
  0xe0   :  { %v218_v25 = vadd.f32 %v434_v20, %v203_v23 }
  0xe1   :  { %v221_v27 = vmax.f32 %v219_v24, 0.0 }
  0xe2   :  { %v220_v26 = vmax.f32 %v218_v25, 0.0 }
  0xe4   :  { %480 = vmatprep.mubr.msk.f32.mxu1 %vm233_vm5, %v220_v26 }
  0xe5   :  { %481 = vmatmul.mubr.msk.f32.vlgmr.msra.gmra.mrb[2].mxu1 %vm233_vm5, %v221_v27 }
 0x1b8   :  { %v482_v32 = vpop.f32.mrb[2].mxu1 }
 0x1b9   :  { %v312_v33 = vadd.f32 %v482_v32, %v435_v31  ;;  %v306_v34 = vpop.f32.mrb[3].mxu1 }
 0x1ba   :  { %v307_v35 = vadd.f32 %v435_v31, %v306_v34 }
 0x1bb   :  { %v316_v37 = vmax.f32 %v312_v33, 0.0 }
 0x1bc   :  { %v315_v36 = vmax.f32 %v307_v35, 0.0 }
 0x1be   :  { %491 = vmatprep.mubr.msk.f32.mxu0 %vm233_vm5, %v315_v36 }
 0x1bf   :  { %492 = vmatmul.mubr.msk.f32.vlgmr.msra.gmra.mrb[2].mxu0 %vm233_vm5, %v316_v37 }
 0x292   :  { %v493_v39 = vpop.f32.mrb[2].mxu0 }
 0x293   :  { %v406_v40 = vadd.f32 %v493_v39, %v438_v38  ;;  %v400_v41 = vpop.f32.mrb[3].mxu0 }
 0x294   :  { %v401_v42 = vadd.f32 %v438_v38, %v400_v41 }
 0x295   :  { %411 = vst.msk [vmem:[#allocation2 + $0x8] sm:$0xff] %vm409_vm6, %v406_v40 }
 0x296   :  { %410 = vst.msk [vmem:[#allocation2] sm:$0xff] %vm409_vm6, %v401_v42 }
 0x297   :  { %533 = shalt.err (!%p530_p4)
}
 0x298   :  { %s534_s8 = scalar_lea.hbm %s679_s9, 256 }
 0x299   :  { %p535_p5 = scmp.ne.s32.totalorder %s679_s9, %s534_s8  ;;  %p538_p6 = scmp.lt.u32.totalorder %s534_s8, %s679_s9 }
 0x29b   :  { %p540_p7 = pnand %p538_p6, %p535_p5 }
 0x29d   :  { %543 = shalt.err (!%p540_p7)
}
 0x29e   :  { %s548_s22 = smov 128   ;;  %s549_s23 = smov 8  }
 0x29f   :  { %423 = dma.vmem_to_hbm [thread:$0]  %s418_s18, 256, %s679_s9, [#allocation3], %s548_s22, %s548_s22, %s549_s23  }
 0x2a0   :  { %544 = dma.done.wait [#allocation3], 256  }
 0x2a1   :  { %545 = vsyncadd [#allocation3], 4294967040 }
 0x2a2   :  { %427 = vsyncpa [#allocation3], 1 }

</bundles_post_ra>
